<compile_context>
chip_gen: v7x
topology: tpu7x:2x2x1
jax: 0.10.0
libtpu: 0.0.40
codegen_flags: <defaults>
</compile_context>

<pallas_src>
import math

import jax
import jax.numpy as jnp
from jax.experimental import pallas as pl
from jax.experimental.pallas import tpu as pltpu


def _round_up(x, m):
    return (x + m - 1) // m * m


# --------------------------------------------------------------------------
# Kernel A: weights fully VMEM-resident (single row grid axis).
# --------------------------------------------------------------------------
def ffn_kernel_resident(x_ref, w1_ref, b1_ref, w2_ref, b2_ref, o_ref):
    # (tm, Din) @ (Din, Dh) -> f32 on the MXU
    h = jnp.dot(x_ref[...], w1_ref[...], preferred_element_type=jnp.float32)
    h = jnp.maximum(h + b1_ref[...], 0.0)                      # bias + ReLU (f32 VPU)
    # (tm, Dh) @ (Dh, Dout) -> f32
    y = jnp.dot(h.astype(w2_ref.dtype), w2_ref[...],
                preferred_element_type=jnp.float32)
    o_ref[...] = (y + b2_ref[...]).astype(o_ref.dtype)


# --------------------------------------------------------------------------
# Kernel B: streamed hidden dim; accumulate directly into the f32 output block.
# --------------------------------------------------------------------------
def ffn_kernel_streamed(x_ref, w1_ref, b1_ref, w2_ref, b2_ref, o_ref):
    k = pl.program_id(1)

    @pl.when(k == 0)
    def _init():
        # Fold the output bias into the accumulator init.
        o_ref[...] = jnp.broadcast_to(b2_ref[...], o_ref.shape).astype(o_ref.dtype)

    h = jnp.dot(x_ref[...], w1_ref[...], preferred_element_type=jnp.float32)
    h = jnp.maximum(h + b1_ref[...], 0.0)
    o_ref[...] += jnp.dot(h.astype(w2_ref.dtype), w2_ref[...],
                          preferred_element_type=jnp.float32)


# --------------------------------------------------------------------------
# Wrapper
# --------------------------------------------------------------------------
def feed_forward(x, w1, b1, w2, b2, *, compute_dtype=jnp.bfloat16,
                 tm=None, tk=None, weights_resident=None):
    """Pallas equivalent of FeedForward.forward (eval mode).

    x : (..., Din) float32
    w1: (Din, Dh),  b1: (Dh,)       (PyTorch Linear weights pre-transposed)
    w2: (Dh, Dout), b2: (Dout,)
    compute_dtype: dtype of the MXU operands (bf16 default; f32 supported);
                   accumulation / bias / ReLU are always f32.
    """
    *lead, din = x.shape
    dh = w1.shape[1]
    dout = w2.shape[1]
    assert din % 128 == 0 and dh % 128 == 0 and dout % 128 == 0, \
        "feature dims must be multiples of 128 (lane width)"

    n = math.prod(lead) if lead else 1
    cbytes = jnp.dtype(compute_dtype).itemsize
    row_align = 16 if cbytes < 4 else 8          # bf16 packs 2 rows / sublane

    # Large, aligned row tile; pad row count to a multiple of it.
    if tm is None:
        tm = min(256, _round_up(n, row_align))
    tm = _round_up(tm, row_align)
    n_pad = _round_up(n, tm)

    # Hidden-dim tile (streamed-K path only): biggest aligned divisor.
    if tk is None:
        tk = dh
        for cand in (512, 256, 128):
            if dh % cand == 0:
                tk = cand
                break
    assert dh % tk == 0

    # Keep W1+W2 VMEM-resident whenever they fit comfortably (v7x-safe budget).
    weight_bytes = (din * dh + dh * dout) * cbytes
    if weights_resident is None:
        weights_resident = weight_bytes <= 24 * (1 << 20)

    x2 = x.reshape(n, din)
    if n_pad != n:
        x2 = jnp.pad(x2, ((0, n_pad - n), (0, 0)))
    x2 = x2.astype(compute_dtype)
    w1c = w1.astype(compute_dtype)
    w2c = w2.astype(compute_dtype)
    b1r = b1.reshape(1, dh).astype(jnp.float32)
    b2r = b2.reshape(1, dout).astype(jnp.float32)

    cost = pl.CostEstimate(
        flops=2 * n_pad * (din * dh + dh * dout),
        transcendentals=0,
        bytes_accessed=((n_pad * din + din * dh + dh * dout) * cbytes
                        + (dh + dout) * 4 + n_pad * dout * 4))

    if weights_resident:
        grid = (n_pad // tm,)
        in_specs = [
            pl.BlockSpec((tm, din), lambda i: (i, 0)),      # x row tile
            pl.BlockSpec((din, dh), lambda i: (0, 0)),      # W1 (resident)
            pl.BlockSpec((1, dh), lambda i: (0, 0)),        # b1 (resident)
            pl.BlockSpec((dh, dout), lambda i: (0, 0)),     # W2 (resident)
            pl.BlockSpec((1, dout), lambda i: (0, 0)),      # b2 (resident)
        ]
        out_specs = pl.BlockSpec((tm, dout), lambda i: (i, 0))
        kernel = ffn_kernel_resident
        dim_sem = ("parallel",)
        vmem_needed = (2 * (tm * din * cbytes + tm * dout * 4)   # x + out (dbl buf)
                       + weight_bytes + (dh + dout) * 4          # resident weights
                       + tm * dh * 4)                            # hidden activation
    else:
        grid = (n_pad // tm, dh // tk)
        in_specs = [
            pl.BlockSpec((tm, din), lambda i, k: (i, 0)),   # x row tile
            pl.BlockSpec((din, tk), lambda i, k: (0, k)),   # W1 column slice
            pl.BlockSpec((1, tk), lambda i, k: (0, k)),     # b1 slice
            pl.BlockSpec((tk, dout), lambda i, k: (k, 0)),  # W2 row slice
            pl.BlockSpec((1, dout), lambda i, k: (0, 0)),   # b2
        ]
        out_specs = pl.BlockSpec((tm, dout), lambda i, k: (i, 0))
        kernel = ffn_kernel_streamed
        dim_sem = ("parallel", "arbitrary")
        vmem_needed = (2 * (tm * din + din * tk + tk * dout) * cbytes
                       + 2 * (tk + dout) * 4
                       + 2 * tm * dout * 4
                       + tm * tk * 4)

    # Explicit VMEM budget: above the stingy defaults (16/32 MiB), but clamped
    # so it still fits v7x's 64 MiB physical VMEM.
    vmem_limit = int(min(max(int(vmem_needed * 1.5) + (4 << 20), 32 << 20),
                         56 << 20))

    out = pl.pallas_call(
        kernel,
        out_shape=jax.ShapeDtypeStruct((n_pad, dout), jnp.float32),
        grid_spec=pltpu.PrefetchScalarGridSpec(
            num_scalar_prefetch=0,
            grid=grid,
            in_specs=in_specs,
            out_specs=out_specs,
        ),
        compiler_params=pltpu.CompilerParams(
            dimension_semantics=dim_sem,
            vmem_limit_bytes=vmem_limit),
        cost_estimate=cost,
    )(x2, w1c, b1r, w2c, b2r)

    out = out[:n]
    # TODO(synk): training-mode dropout (F.dropout with training=True) is not
    # implemented; eval-mode dropout is the identity.
    return out.reshape(*lead, dout)


# --------------------------------------------------------------------------
# Pure-JAX reference (identical casting discipline to the kernel)
# --------------------------------------------------------------------------
def reference_forward(x, w1, b1, w2, b2, compute_dtype=jnp.float32):
    xc = x.astype(compute_dtype)
    h = jnp.dot(xc, w1.astype(compute_dtype),
                preferred_element_type=jnp.float32) + b1
    h = jnp.maximum(h, 0.0)
    y = jnp.dot(h.astype(compute_dtype), w2.astype(compute_dtype),
                preferred_element_type=jnp.float32) + b2
    return y


def init_linear(key, fan_in, fan_out):
    # PyTorch nn.Linear default init: U(-1/sqrt(fan_in), 1/sqrt(fan_in)),
    # stored transposed as (fan_in, fan_out) so the kernel does x @ W + b.
    wkey, bkey = jax.random.split(key)
    bound = 1.0 / math.sqrt(fan_in)
    w = jax.random.uniform(wkey, (fan_in, fan_out), jnp.float32, -bound, bound)
    b = jax.random.uniform(bkey, (fan_out,), jnp.float32, -bound, bound)
    return w, b


if __name__ == "__main__":
    # FeedForward(dim_in=128, dim_hidden=512, dim_out=128, dropout=0.0), eval.
    # Lane-dense feature dims; batch=2, seq=8 -> 16 rows.
    B, S = 2, 8
    dim_in, dim_hidden, dim_out = 128, 512, 128

    key = jax.random.PRNGKey(0)
    xkey, k1, k2 = jax.random.split(key, 3)
    x = jax.random.normal(xkey, (B, S, dim_in), jnp.float32)
    w1, b1 = init_linear(k1, dim_in, dim_hidden)
    w2, b2 = init_linear(k2, dim_hidden, dim_out)

    ref_f32 = reference_forward(x, w1, b1, w2, b2, compute_dtype=jnp.float32)
    ref_bf16 = reference_forward(x, w1, b1, w2, b2, compute_dtype=jnp.bfloat16)

    # 1) weights-resident path, f32 MXU operands (exact vs reference)
    out_f32 = feed_forward(x, w1, b1, w2, b2, compute_dtype=jnp.float32)
    out_f32 = jax.block_until_ready(out_f32)
    assert out_f32.shape == (B, S, dim_out)
    assert bool(jnp.allclose(out_f32, ref_f32, atol=1e-4, rtol=1e-4)), "f32 mismatch"

    # 2) weights-resident path, bf16 MXU operands / f32 accumulation (default)
    out_bf16 = feed_forward(x, w1, b1, w2, b2)
    out_bf16 = jax.block_until_ready(out_bf16)
    assert bool(jnp.allclose(out_bf16, ref_bf16, atol=2e-2, rtol=2e-2)), \
        "bf16 resident mismatch"

    # 3) streamed-K fallback path (forced), bf16 operands, multiple k steps
    out_stream = feed_forward(x, w1, b1, w2, b2, weights_resident=False, tk=128)
    out_stream = jax.block_until_ready(out_stream)
    assert bool(jnp.allclose(out_stream, ref_bf16, atol=2e-2, rtol=2e-2)), \
        "bf16 streamed mismatch"

    print("KERNEL_OK")
</pallas_src>

<mosaic_0001>
module attributes {stable_mosaic.version = 11 : i64} {
  func.func @ffn_kernel_resident(%arg0: i32, %arg1: memref<16x128xf32, #tpu.memory_space<vmem>>, %arg2: memref<128x512xf32, #tpu.memory_space<vmem>>, %arg3: memref<1x512xf32, #tpu.memory_space<vmem>>, %arg4: memref<512x128xf32, #tpu.memory_space<vmem>>, %arg5: memref<1x128xf32, #tpu.memory_space<vmem>>, %arg6: memref<16x128xf32, #tpu.memory_space<vmem>>) attributes {dimension_semantics = [#tpu.dimension_semantics<parallel>], iteration_bounds = array<i64: 1>, scalar_prefetch = 0 : i64, scratch_operands = 0 : i64, tpu.core_type = #tpu.core_type<tc>, window_params = [{transform_indices = @transform_0, window_bounds = array<i64: 16, 128>}, {pipeline_mode = #tpu.pipeline_mode<synchronous>, transform_indices = @transform_1, window_bounds = array<i64: 128, 512>}, {pipeline_mode = #tpu.pipeline_mode<synchronous>, transform_indices = @transform_2, window_bounds = array<i64: 1, 512>}, {pipeline_mode = #tpu.pipeline_mode<synchronous>, transform_indices = @transform_3, window_bounds = array<i64: 512, 128>}, {pipeline_mode = #tpu.pipeline_mode<synchronous>, transform_indices = @transform_4, window_bounds = array<i64: 1, 128>}, {transform_indices = @transform_5, window_bounds = array<i64: 16, 128>}]} {
    %c0 = arith.constant 0 : index
    %c0_0 = arith.constant 0 : index
    %0 = vector.load %arg1[%c0, %c0_0] : memref<16x128xf32, #tpu.memory_space<vmem>>, vector<16x128xf32>
    %c0_1 = arith.constant 0 : index
    %c0_2 = arith.constant 0 : index
    %1 = vector.load %arg2[%c0_1, %c0_2] : memref<128x512xf32, #tpu.memory_space<vmem>>, vector<128x512xf32>
    %cst = arith.constant dense<0.000000e+00> : vector<16x512xf32>
    %2 = tpu.matmul %0, %1, %cst {dimension_numbers = #tpu.dot_dimension_numbers<[1], [0], [0], [1], [0, 0, 1, 1], [], []>} : vector<16x128xf32>, vector<128x512xf32>, vector<16x512xf32> -> vector<16x512xf32>
    %c0_3 = arith.constant 0 : index
    %c0_4 = arith.constant 0 : index
    %3 = vector.load %arg3[%c0_3, %c0_4] : memref<1x512xf32, #tpu.memory_space<vmem>>, vector<1x512xf32>
    %4 = vector.broadcast %3 : vector<1x512xf32> to vector<16x512xf32>
    %5 = arith.addf %2, %4 : vector<16x512xf32>
    %cst_5 = arith.constant 0.000000e+00 : f32
    %6 = vector.broadcast %cst_5 : f32 to vector<16x512xf32>
    %7 = arith.maximumf %5, %6 : vector<16x512xf32>
    %c0_6 = arith.constant 0 : index
    %c0_7 = arith.constant 0 : index
    %8 = vector.load %arg4[%c0_6, %c0_7] : memref<512x128xf32, #tpu.memory_space<vmem>>, vector<512x128xf32>
    %cst_8 = arith.constant dense<0.000000e+00> : vector<16x128xf32>
    %9 = tpu.matmul %7, %8, %cst_8 {dimension_numbers = #tpu.dot_dimension_numbers<[1], [0], [0], [1], [0, 0, 1, 1], [], []>} : vector<16x512xf32>, vector<512x128xf32>, vector<16x128xf32> -> vector<16x128xf32>
    %c0_9 = arith.constant 0 : index
    %c0_10 = arith.constant 0 : index
    %10 = vector.load %arg5[%c0_9, %c0_10] : memref<1x128xf32, #tpu.memory_space<vmem>>, vector<1x128xf32>
    %11 = vector.broadcast %10 : vector<1x128xf32> to vector<16x128xf32>
    %12 = arith.addf %9, %11 : vector<16x128xf32>
    %c0_11 = arith.constant 0 : index
    %c0_12 = arith.constant 0 : index
    %13 = vector.load %arg6[%c0_11, %c0_12] : memref<16x128xf32, #tpu.memory_space<vmem>>, vector<16x128xf32>
    tpu.vector_store %arg6[%c0_11, %c0_12], %12 {strides = array<i32>} : memref<16x128xf32, #tpu.memory_space<vmem>>, vector<16x128xf32>,
    return
  }
  func.func @transform_0(%arg0: i32) -> (i32, i32) {
    %c0_i32 = arith.constant 0 : i32
    %c0_i32_0 = arith.constant 0 : i32
    return %arg0, %c0_i32 : i32, i32
  }
  func.func @transform_1(%arg0: i32) -> (i32, i32) {
    %c0_i32 = arith.constant 0 : i32
    %c0_i32_0 = arith.constant 0 : i32
    %c0_i32_1 = arith.constant 0 : i32
    return %c0_i32, %c0_i32_0 : i32, i32
  }
  func.func @transform_2(%arg0: i32) -> (i32, i32) {
    %c0_i32 = arith.constant 0 : i32
    %c0_i32_0 = arith.constant 0 : i32
    %c0_i32_1 = arith.constant 0 : i32
    return %c0_i32, %c0_i32_0 : i32, i32
  }
  func.func @transform_3(%arg0: i32) -> (i32, i32) {
    %c0_i32 = arith.constant 0 : i32
    %c0_i32_0 = arith.constant 0 : i32
    %c0_i32_1 = arith.constant 0 : i32
    return %c0_i32, %c0_i32_0 : i32, i32
  }
  func.func @transform_4(%arg0: i32) -> (i32, i32) {
    %c0_i32 = arith.constant 0 : i32
    %c0_i32_0 = arith.constant 0 : i32
    %c0_i32_1 = arith.constant 0 : i32
    return %c0_i32, %c0_i32_0 : i32, i32
  }
  func.func @transform_5(%arg0: i32) -> (i32, i32) {
    %c0_i32 = arith.constant 0 : i32
    %c0_i32_0 = arith.constant 0 : i32
    return %arg0, %c0_i32 : i32, i32
  }
}

</mosaic_0001>

<bundles_post_ra>
// kernel: tpu_custom_call.1
= control target key start
LH: loop header
LB: loop body
LE: loop exit
PB: predicated region body
PF: predicated region fallthrough
CT: control target
= control target key end

     0   :  { %10 = vsyncpa [#allocation3], 0  ;;  %s967_s0 = inlined_call_operand.hbm [shape: f32[16,128], index: 0, kind: input, shape index: {}]   ;;  %s968_s1 = inlined_call_operand.hbm [shape: f32[128,512], index: 1, kind: input, shape index: {}]   ;;  %s969_s2 = inlined_call_operand.vmem [shape: f32[1,512], index: 2, kind: input, shape index: {}]   ;;  %s970_s3 = inlined_call_operand.hbm [shape: f32[512,128], index: 3, kind: input, shape index: {}]   ;;  %s971_s4 = inlined_call_operand.vmem [shape: f32[1,128], index: 4, kind: input, shape index: {}]   ;;  %s972_s5 = inlined_call_operand.hbm [shape: f32[16,128], index: 5, kind: output, shape index: {}]  }
   0x1   :  { %11 = vsyncpa [#allocation6], 0 }
   0x2   :  { %12 = vsyncpa [#allocation4], 0  ;;  %s861_s18 = smov [#allocation5]   ;;  %s767_s22 = scalar_lea.hbm %s968_s1, 8192 }
   0x3   :  { %s30_s19 = sshll.u32 %s861_s18, 4  ;;  %p768_p0 = scmp.ne.s32.totalorder %s968_s1, %s767_s22  ;;  %s31_s19 = int_to_ptr.vmem [resolvable:$true] %s30_s19 }
   0x4   :  { %p771_p1 = scmp.lt.u32.totalorder %s767_s22, %s968_s1 }
   0x6   :  { %p773_p2 = pnand %p771_p1, %p768_p0 }
   0x8   :  { %776 = shalt.err (!%p773_p2)
}
   0x9   :  { %s777_s27 = scalar_lea.vmem %s31_s19, 8192  ;;  %p782_p4 = scmp.lt.s32.totalorder %s31_s19, %s31_s19 }
   0xa   :  { %p778_p3 = scmp.ne.s32.totalorder %s31_s19, %s777_s27  ;;  %p783_p5 = scmp.lt.s32.totalorder %s777_s27, %s777_s27 }
   0xc   :  { %p784_p6 = por %p783_p5, %p782_p4 }
   0xe   :  { %p785_p7 = pnand %p784_p6, %p778_p3 }
  0x10   :  { %788 = shalt.err (!%p785_p7)
}
  0x11   :  { %s862_s28 = smov 512   ;;  %s863_s29 = smov 32  }
  0x12   :  { %36 = dma.hbm_to_vmem [thread:$0]  %s968_s1, 8192, %s31_s19, [#allocation6], %s862_s28, %s862_s28, %s863_s29  }
  0x13   :  { %s864_s7 = smov [#allocation2]   ;;  %s789_s11 = scalar_lea.hbm %s967_s0, 256 }
  0x14   :  { %s18_s8 = sshll.u32 %s864_s7, 4  ;;  %p790_p8 = scmp.ne.s32.totalorder %s967_s0, %s789_s11  ;;  %s19_s8 = int_to_ptr.vmem [resolvable:$true] %s18_s8 }
  0x15   :  { %p793_p9 = scmp.lt.u32.totalorder %s789_s11, %s967_s0 }
  0x17   :  { %p795_p10 = pnand %p793_p9, %p790_p8 }
  0x19   :  { %798 = shalt.err (!%p795_p10)
}
  0x1a   :  { %s799_s16 = scalar_lea.vmem %s19_s8, 256  ;;  %p804_p12 = scmp.lt.s32.totalorder %s19_s8, %s19_s8 }
  0x1b   :  { %p800_p11 = scmp.ne.s32.totalorder %s19_s8, %s799_s16  ;;  %p805_p13 = scmp.lt.s32.totalorder %s799_s16, %s799_s16 }
  0x1d   :  { %p806_p0 = por %p805_p13, %p804_p12 }
  0x1f   :  { %p807_p1 = pnand %p806_p0, %p800_p11 }
  0x21   :  { %810 = shalt.err (!%p807_p1)
}
  0x22   :  { %s865_s1 = smov 128   ;;  %s866_s17 = smov 8  }
  0x23   :  { %24 = dma.hbm_to_vmem [thread:$0]  %s967_s0, 256, %s19_s8, [#allocation3], %s865_s1, %s865_s1, %s866_s17  }
  0x24   :  { %s867_s20 = smov [#allocation7]   ;;  %s811_s24 = scalar_lea.hbm %s970_s3, 8192 }
  0x25   :  { %s44_s21 = sshll.u32 %s867_s20, 4  ;;  %p812_p2 = scmp.ne.s32.totalorder %s970_s3, %s811_s24  ;;  %s45_s21 = int_to_ptr.vmem [resolvable:$true] %s44_s21 }
  0x26   :  { %p815_p3 = scmp.lt.u32.totalorder %s811_s24, %s970_s3 }
  0x28   :  { %p817_p4 = pnand %p815_p3, %p812_p2 }
  0x2a   :  { %820 = shalt.err (!%p817_p4)
}
  0x2b   :  { %s821_s29 = scalar_lea.vmem %s45_s21, 8192  ;;  %p826_p6 = scmp.lt.s32.totalorder %s45_s21, %s45_s21 }
  0x2c   :  { %p822_p5 = scmp.ne.s32.totalorder %s45_s21, %s821_s29  ;;  %p827_p7 = scmp.lt.s32.totalorder %s821_s29, %s821_s29 }
  0x2e   :  { %p828_p8 = por %p827_p7, %p826_p6 }
  0x30   :  { %p829_p9 = pnand %p828_p8, %p822_p5 }
  0x32   :  { %832 = shalt.err (!%p829_p9)
}
  0x33   :  { %50 = dma.hbm_to_vmem [thread:$0]  %s970_s3, 8192, %s45_s21, [#allocation6], %s865_s1, %s865_s1, %s866_s17  }
  0x34   :  { %855 = dma.done.wait [#allocation3], 256  }
  0x35   :  { %856 = vsyncadd [#allocation3], 4294967040 }
  0x36   :  { %857 = dma.done.wait [#allocation6], 16384  }
  0x37   :  { %858 = vsyncadd [#allocation6], 4294950912  ;;  %v868_v0 = vmov 0.0   ;;  %v65_v1 = vld [vmem:[#allocation5 + $0x8] sm:$0xff]  ;;  %v67_v3 = vld [vmem:[#allocation5 + $0x18] sm:$0xff]  ;;  %s869_s8 = smov [#allocation8]  }
  0x38   :  { %214 = vmatprep.mubr.f32.mxu0 %v868_v0  ;;  %291 = vmatprep.mubr.f32.mxu1 %v868_v0  ;;  %v69_v2 = vld [vmem:[#allocation5 + $0x28] sm:$0xff]  ;;  %v71_v5 = vld [vmem:[#allocation5 + $0x38] sm:$0xff]  ;;  %v64_v6 = vld [vmem:[#allocation5] sm:$0xff]  ;;  %s540_s9 = sshll.u32 %s869_s8, 4  ;;  %s541_s9 = int_to_ptr.vmem [resolvable:$true] %s540_s9 }
  0x39   :  { %v630_v4 = vpack.c.bf16 %v69_v2, %v65_v1  ;;  %v68_v7 = vld [vmem:[#allocation5 + $0x20] sm:$0xff]  ;;  %v662_v8 = vpack.c.bf16 %v71_v5, %v67_v3  ;;  %v66_v10 = vld [vmem:[#allocation5 + $0x10] sm:$0xff]  ;;  %v73_v12 = vld [vmem:[#allocation5 + $0x48] sm:$0xff]  ;;  %p838_p11 = scmp.lt.s32.totalorder %s541_s9, %s541_s9 }
  0x3a   :  { %v632_v9 = vpack.c.bf16 %v68_v7, %v64_v6  ;;  %v70_v11 = vld [vmem:[#allocation5 + $0x30] sm:$0xff]  ;;  %v77_v14 = vld [vmem:[#allocation5 + $0x68] sm:$0xff]  ;;  %v75_v15 = vld [vmem:[#allocation5 + $0x58] sm:$0xff] }
  0x3b   :  { %631 = vmatprep.subr.bf16.mxu0 %v630_v4  ;;  %v664_v13 = vpack.c.bf16 %v70_v11, %v66_v10  ;;  %v79_v16 = vld [vmem:[#allocation5 + $0x78] sm:$0xff]  ;;  %663 = vmatprep.subr.bf16.mxu1 %v662_v8  ;;  %v634_v17 = vpack.c.bf16 %v77_v14, %v73_v12  ;;  %v72_v19 = vld [vmem:[#allocation5 + $0x40] sm:$0xff]  ;;  %v74_v21 = vld [vmem:[#allocation5 + $0x50] sm:$0xff] }
  0x3c   :  { %633 = vmatpush1.bf16.msra.mxu0 %v632_v9  ;;  %v666_v18 = vpack.c.bf16 %v79_v16, %v75_v15  ;;  %v76_v20 = vld [vmem:[#allocation5 + $0x60] sm:$0xff]  ;;  %v78_v23 = vld [vmem:[#allocation5 + $0x70] sm:$0xff]  ;;  %v81_v24 = vld [vmem:[#allocation5 + $0x88] sm:$0xff] }
  0x3d   :  { %665 = vmatpush1.bf16.msra.mxu1 %v664_v13  ;;  %v636_v22 = vpack.c.bf16 %v76_v20, %v72_v19  ;;  %v85_v25 = vld [vmem:[#allocation5 + $0xa8] sm:$0xff]  ;;  %635 = vmatprep.subr.bf16.mxu0 %v634_v17  ;;  %v668_v26 = vpack.c.bf16 %v78_v23, %v74_v21  ;;  %v83_v28 = vld [vmem:[#allocation5 + $0x98] sm:$0xff]  ;;  %v80_v30 = vld [vmem:[#allocation5 + $0x80] sm:$0xff] }
  0x3e   :  { %667 = vmatprep.subr.bf16.mxu1 %v666_v18  ;;  %v638_v27 = vpack.c.bf16 %v85_v25, %v81_v24  ;;  %v87_v29 = vld [vmem:[#allocation5 + $0xb8] sm:$0xff]  ;;  %v84_v32 = vld [vmem:[#allocation5 + $0xa0] sm:$0xff]  ;;  %v82_v33 = vld [vmem:[#allocation5 + $0x90] sm:$0xff] }
  0x3f   :  { %v670_v31 = vpack.c.bf16 %v87_v29, %v83_v28  ;;  %v86_v34 = vld [vmem:[#allocation5 + $0xb0] sm:$0xff]  ;;  %v640_v35 = vpack.c.bf16 %v84_v32, %v80_v30  ;;  %v89_v36 = vld [vmem:[#allocation5 + $0xc8] sm:$0xff]  ;;  %v91_v38 = vld [vmem:[#allocation5 + $0xd8] sm:$0xff] }
  0x40   :  { %637 = vmatpush1.bf16.msra.mxu0 %v636_v22  ;;  %v93_v37 = vld [vmem:[#allocation5 + $0xe8] sm:$0xff]  ;;  %v672_v39 = vpack.c.bf16 %v86_v34, %v82_v33  ;;  %v95_v41 = vld [vmem:[#allocation5 + $0xf8] sm:$0xff]  ;;  %v88_v42 = vld [vmem:[#allocation5 + $0xc0] sm:$0xff] }
  0x41   :  { %669 = vmatpush1.bf16.msra.mxu1 %v668_v26  ;;  %639 = vmatprep.subr.bf16.mxu0 %v638_v27  ;;  %v642_v40 = vpack.c.bf16 %v93_v37, %v89_v36  ;;  %v92_v43 = vld [vmem:[#allocation5 + $0xe0] sm:$0xff]  ;;  %v674_v44 = vpack.c.bf16 %v95_v41, %v91_v38  ;;  %v90_v45 = vld [vmem:[#allocation5 + $0xd0] sm:$0xff]  ;;  %v97_v47 = vld [vmem:[#allocation5 + $0x108] sm:$0xff] }
  0x42   :  { %671 = vmatprep.subr.bf16.mxu1 %v670_v31  ;;  %v94_v46 = vld [vmem:[#allocation5 + $0xf0] sm:$0xff]  ;;  %v101_v48 = vld [vmem:[#allocation5 + $0x128] sm:$0xff]  ;;  %v99_v49 = vld [vmem:[#allocation5 + $0x118] sm:$0xff]  ;;  %v644_v51 = vpack.c.bf16 %v92_v43, %v88_v42 }
  0x43   :  { %v103_v50 = vld [vmem:[#allocation5 + $0x138] sm:$0xff]  ;;  %v676_v52 = vpack.c.bf16 %v94_v46, %v90_v45  ;;  %v646_v53 = vpack.c.bf16 %v101_v48, %v97_v47  ;;  %v96_v54 = vld [vmem:[#allocation5 + $0x100] sm:$0xff]  ;;  %v98_v56 = vld [vmem:[#allocation5 + $0x110] sm:$0xff] }
  0x44   :  { %641 = vmatpush1.bf16.msra.mxu0 %v640_v35  ;;  %v100_v55 = vld [vmem:[#allocation5 + $0x120] sm:$0xff]  ;;  %v678_v57 = vpack.c.bf16 %v103_v50, %v99_v49  ;;  %v102_v58 = vld [vmem:[#allocation5 + $0x130] sm:$0xff]  ;;  %v105_v59 = vld [vmem:[#allocation5 + $0x148] sm:$0xff] }
  0x45   :  { %673 = vmatpush1.bf16.msra.mxu1 %v672_v39  ;;  %643 = vmatprep.subr.bf16.mxu0 %v642_v40  ;;  %v109_v60 = vld [vmem:[#allocation5 + $0x168] sm:$0xff]  ;;  %v107_v61 = vld [vmem:[#allocation5 + $0x158] sm:$0xff]  ;;  %v648_v63 = vpack.c.bf16 %v100_v55, %v96_v54  ;;  %v680_v1 = vpack.c.bf16 %v102_v58, %v98_v56  ;;  %v104_v3 = vld [vmem:[#allocation5 + $0x140] sm:$0xff] }
  0x46   :  { %675 = vmatprep.subr.bf16.mxu1 %v674_v44  ;;  %v111_v62 = vld [vmem:[#allocation5 + $0x178] sm:$0xff]  ;;  %v650_v2 = vpack.c.bf16 %v109_v60, %v105_v59  ;;  %v108_v4 = vld [vmem:[#allocation5 + $0x160] sm:$0xff]  ;;  %v106_v5 = vld [vmem:[#allocation5 + $0x150] sm:$0xff] }
  0x47   :  { %v682_v6 = vpack.c.bf16 %v111_v62, %v107_v61  ;;  %v110_v7 = vld [vmem:[#allocation5 + $0x170] sm:$0xff]  ;;  %v113_v8 = vld [vmem:[#allocation5 + $0x188] sm:$0xff]  ;;  %v115_v10 = vld [vmem:[#allocation5 + $0x198] sm:$0xff]  ;;  %v652_v12 = vpack.c.bf16 %v108_v4, %v104_v3 }
  0x48   :  { %645 = vmatpush1.bf16.msra.mxu0 %v644_v51  ;;  %v117_v9 = vld [vmem:[#allocation5 + $0x1a8] sm:$0xff]  ;;  %v119_v11 = vld [vmem:[#allocation5 + $0x1b8] sm:$0xff]  ;;  %v684_v13 = vpack.c.bf16 %v110_v7, %v106_v5  ;;  %v112_v15 = vld [vmem:[#allocation5 + $0x180] sm:$0xff] }
  0x49   :  { %677 = vmatpush1.bf16.msra.mxu1 %v676_v52  ;;  %647 = vmatprep.subr.bf16.mxu0 %v646_v53  ;;  %v654_v14 = vpack.c.bf16 %v117_v9, %v113_v8  ;;  %v116_v16 = vld [vmem:[#allocation5 + $0x1a0] sm:$0xff]  ;;  %v114_v17 = vld [vmem:[#allocation5 + $0x190] sm:$0xff]  ;;  %v686_v18 = vpack.c.bf16 %v119_v11, %v115_v10  ;;  %v121_v20 = vld [vmem:[#allocation5 + $0x1c8] sm:$0xff] }
  0x4a   :  { %679 = vmatprep.subr.bf16.mxu1 %v678_v57  ;;  %v118_v19 = vld [vmem:[#allocation5 + $0x1b0] sm:$0xff]  ;;  %v125_v21 = vld [vmem:[#allocation5 + $0x1e8] sm:$0xff]  ;;  %v123_v22 = vld [vmem:[#allocation5 + $0x1d8] sm:$0xff]  ;;  %v656_v24 = vpack.c.bf16 %v116_v16, %v112_v15 }
  0x4b   :  { %v127_v23 = vld [vmem:[#allocation5 + $0x1f8] sm:$0xff]  ;;  %v688_v25 = vpack.c.bf16 %v118_v19, %v114_v17  ;;  %v658_v26 = vpack.c.bf16 %v125_v21, %v121_v20  ;;  %v120_v27 = vld [vmem:[#allocation5 + $0x1c0] sm:$0xff]  ;;  %v122_v29 = vld [vmem:[#allocation5 + $0x1d0] sm:$0xff] }
  0x4c   :  { %649 = vmatpush1.bf16.msra.mxu0 %v648_v63  ;;  %v124_v28 = vld [vmem:[#allocation5 + $0x1e0] sm:$0xff]  ;;  %v690_v30 = vpack.c.bf16 %v127_v23, %v123_v22  ;;  %v126_v31 = vld [vmem:[#allocation5 + $0x1f0] sm:$0xff]  ;;  %v329_v33 = vld [vmem:[#allocation7 + $0x88] sm:$0xff] }
  0x4d   :  { %681 = vmatpush1.bf16.msra.mxu1 %v680_v1  ;;  %651 = vmatprep.subr.bf16.mxu0 %v650_v2  ;;  %v328_v32 = vld [vmem:[#allocation7 + $0x80] sm:$0xff]  ;;  %v361_v35 = vld [vmem:[#allocation7 + $0x188] sm:$0xff]  ;;  %v660_v36 = vpack.c.bf16 %v124_v28, %v120_v27  ;;  %v692_v37 = vpack.c.bf16 %v126_v31, %v122_v29  ;;  %v330_v44 = vld [vmem:[#allocation7 + $0x90] sm:$0xff] }
  0x4e   :  { %683 = vmatprep.subr.bf16.mxu1 %v682_v6  ;;  %v360_v34 = vld [vmem:[#allocation7 + $0x180] sm:$0xff]  ;;  %v694_v38 = vpack.c.bf16 %v329_v33, %v328_v32  ;;  %v313_v41 = vld [vmem:[#allocation7 + $0x8] sm:$0xff]  ;;  %v331_v45 = vld [vmem:[#allocation7 + $0x98] sm:$0xff] }
  0x4f   :  { %v726_v39 = vpack.c.bf16 %v361_v35, %v360_v34  ;;  %v312_v40 = vld [vmem:[#allocation7] sm:$0xff]  ;;  %v345_v43 = vld [vmem:[#allocation7 + $0x108] sm:$0xff]  ;;  %v62_v46 = vld [vmem:[#allocation2] sm:$0xff]  ;;  %v698_v51 = vpack.c.bf16 %v331_v45, %v330_v44 }
  0x50   :  { %653 = vmatpush1.bf16.msra.mxu0 %v652_v12  ;;  %v344_v42 = vld [vmem:[#allocation7 + $0x100] sm:$0xff]  ;;  %v362_v47 = vld [vmem:[#allocation7 + $0x190] sm:$0xff]  ;;  %v363_v48 = vld [vmem:[#allocation7 + $0x198] sm:$0xff]  ;;  %v696_v49 = vpack.c.bf16 %v313_v41, %v312_v40 }
  0x51   :  { %685 = vmatpush1.bf16.msra.mxu1 %v684_v13  ;;  %655 = vmatprep.subr.bf16.mxu0 %v654_v14  ;;  %v728_v50 = vpack.c.bf16 %v345_v43, %v344_v42  ;;  %v314_v52 = vld [vmem:[#allocation7 + $0x10] sm:$0xff]  ;;  %v315_v53 = vld [vmem:[#allocation7 + $0x18] sm:$0xff]  ;;  %v730_v55 = vpack.c.bf16 %v363_v48, %v362_v47  ;;  %v332_v57 = vld [vmem:[#allocation7 + $0xa0] sm:$0xff] }
  0x52   :  { %687 = vmatprep.subr.bf16.mxu1 %v686_v18  ;;  %v346_v54 = vld [vmem:[#allocation7 + $0x110] sm:$0xff]  ;;  %v347_v56 = vld [vmem:[#allocation7 + $0x118] sm:$0xff]  ;;  %v333_v58 = vld [vmem:[#allocation7 + $0xa8] sm:$0xff]  ;;  %v700_v62 = vpack.c.bf16 %v315_v53, %v314_v52 }
  0x53   :  { %v63_v59 = vld [vmem:[#allocation2 + $0x8] sm:$0xff]  ;;  %v364_v60 = vld [vmem:[#allocation7 + $0x1a0] sm:$0xff]  ;;  %v365_v61 = vld [vmem:[#allocation7 + $0x1a8] sm:$0xff]  ;;  %v732_v63 = vpack.c.bf16 %v347_v56, %v346_v54  ;;  %v702_v1 = vpack.c.bf16 %v333_v58, %v332_v57 }
  0x54   :  { %657 = vmatpush1.bf16.msra.mxu0 %v656_v24  ;;  %v316_v2 = vld [vmem:[#allocation7 + $0x20] sm:$0xff]  ;;  %v317_v3 = vld [vmem:[#allocation7 + $0x28] sm:$0xff]  ;;  %v734_v5 = vpack.c.bf16 %v365_v61, %v364_v60  ;;  %v334_v7 = vld [vmem:[#allocation7 + $0xb0] sm:$0xff] }
  0x55   :  { %689 = vmatpush1.bf16.msra.mxu1 %v688_v25  ;;  %659 = vmatprep.subr.bf16.mxu0 %v658_v26  ;;  %v348_v4 = vld [vmem:[#allocation7 + $0x120] sm:$0xff]  ;;  %v349_v6 = vld [vmem:[#allocation7 + $0x128] sm:$0xff]  ;;  %v335_v8 = vld [vmem:[#allocation7 + $0xb8] sm:$0xff] }
  0x56   :  { %691 = vmatprep.subr.bf16.mxu1 %v690_v30  ;;  %v366_v9 = vld [vmem:[#allocation7 + $0x1b0] sm:$0xff]  ;;  %v367_v10 = vld [vmem:[#allocation7 + $0x1b8] sm:$0xff]  ;;  %v736_v11 = vpack.c.bf16 %v349_v6, %v348_v4  ;;  %v706_v12 = vpack.c.bf16 %v335_v8, %v334_v7  ;;  %v336_v18 = vld [vmem:[#allocation7 + $0xc0] sm:$0xff] }
  0x57   :  { %v318_v13 = vld [vmem:[#allocation7 + $0x30] sm:$0xff]  ;;  %v319_v14 = vld [vmem:[#allocation7 + $0x38] sm:$0xff]  ;;  %v738_v16 = vpack.c.bf16 %v367_v10, %v366_v9  ;;  %v337_v19 = vld [vmem:[#allocation7 + $0xc8] sm:$0xff] }
  0x58   :  { %661 = vmatpush1.bf16.msra.mxu0 %v660_v36  ;;  %v350_v15 = vld [vmem:[#allocation7 + $0x130] sm:$0xff]  ;;  %v351_v17 = vld [vmem:[#allocation7 + $0x138] sm:$0xff]  ;;  %v368_v20 = vld [vmem:[#allocation7 + $0x1c0] sm:$0xff]  ;;  %v708_v22 = vpack.c.bf16 %v319_v14, %v318_v13  ;;  %v710_v24 = vpack.c.bf16 %v337_v19, %v336_v18 }
  0x59   :  { %693 = vmatpush1.bf16.msra.mxu1 %v692_v37  ;;  %695 = vmatprep.subr.bf16.mxu0 %v694_v38  ;;  %v369_v21 = vld [vmem:[#allocation7 + $0x1c8] sm:$0xff]  ;;  %v740_v23 = vpack.c.bf16 %v351_v17, %v350_v15  ;;  %v320_v25 = vld [vmem:[#allocation7 + $0x40] sm:$0xff]  ;;  %v338_v30 = vld [vmem:[#allocation7 + $0xd0] sm:$0xff] }
  0x5a   :  { %727 = vmatprep.subr.bf16.mxu1 %v726_v39  ;;  %v321_v26 = vld [vmem:[#allocation7 + $0x48] sm:$0xff]  ;;  %v352_v27 = vld [vmem:[#allocation7 + $0x140] sm:$0xff]  ;;  %v742_v28 = vpack.c.bf16 %v369_v21, %v368_v20  ;;  %v339_v31 = vld [vmem:[#allocation7 + $0xd8] sm:$0xff] }
  0x5b   :  { %215 = vmatmul.mubr.f32.vlgmr.msra.gmra.mrb[0].mxu0 %v62_v46  ;;  %v353_v29 = vld [vmem:[#allocation7 + $0x148] sm:$0xff]  ;;  %v370_v32 = vld [vmem:[#allocation7 + $0x1d0] sm:$0xff]  ;;  %v371_v33 = vld [vmem:[#allocation7 + $0x1d8] sm:$0xff]  ;;  %v712_v34 = vpack.c.bf16 %v321_v26, %v320_v25  ;;  %v714_v36 = vpack.c.bf16 %v339_v31, %v338_v30 }
  0x5c   :  { %292 = vmatmul.mubr.f32.vlgmr.msra.gmra.mrb[0].mxu1 %v62_v46  ;;  %220 = vmatprep.mubr.f32.mxu0 %v868_v0  ;;  %v744_v35 = vpack.c.bf16 %v353_v29, %v352_v27  ;;  %v322_v37 = vld [vmem:[#allocation7 + $0x50] sm:$0xff]  ;;  %v323_v38 = vld [vmem:[#allocation7 + $0x58] sm:$0xff]  ;;  %v746_v40 = vpack.c.bf16 %v371_v33, %v370_v32  ;;  %v340_v42 = vld [vmem:[#allocation7 + $0xe0] sm:$0xff] }
  0x5d   :  { %297 = vmatprep.mubr.f32.mxu1 %v868_v0  ;;  %697 = vmatpush3.bf16.msra.mxu0 %v696_v49  ;;  %v704_v0 = vpack.c.bf16 %v317_v3, %v316_v2  ;;  %v354_v39 = vld [vmem:[#allocation7 + $0x150] sm:$0xff]  ;;  %v355_v41 = vld [vmem:[#allocation7 + $0x158] sm:$0xff]  ;;  %v341_v43 = vld [vmem:[#allocation7 + $0xe8] sm:$0xff]  ;;  %v716_v46 = vpack.c.bf16 %v323_v38, %v322_v37 }
  0x5e   :  { %729 = vmatpush3.bf16.msra.mxu1 %v728_v50  ;;  %699 = vmatprep.subr.bf16.mxu0 %v698_v51  ;;  %v372_v44 = vld [vmem:[#allocation7 + $0x1e0] sm:$0xff]  ;;  %v373_v45 = vld [vmem:[#allocation7 + $0x1e8] sm:$0xff]  ;;  %v748_v47 = vpack.c.bf16 %v355_v41, %v354_v39  ;;  %v718_v48 = vpack.c.bf16 %v341_v43, %v340_v42  ;;  %v342_v56 = vld [vmem:[#allocation7 + $0xf0] sm:$0xff] }
  0x5f   :  { %221 = vmatmul.mubr.f32.gmra.mrb[2].mxu0 %v63_v59  ;;  %731 = vmatprep.subr.bf16.mxu1 %v730_v55  ;;  %v750_v49 = vpack.c.bf16 %v373_v45, %v372_v44  ;;  %v324_v50 = vld [vmem:[#allocation7 + $0x60] sm:$0xff]  ;;  %v325_v51 = vld [vmem:[#allocation7 + $0x68] sm:$0xff]  ;;  %v343_v57 = vld [vmem:[#allocation7 + $0xf8] sm:$0xff] }
  0x60   :  { %298 = vmatmul.mubr.f32.gmra.mrb[2].mxu1 %v63_v59  ;;  %v356_v52 = vld [vmem:[#allocation7 + $0x160] sm:$0xff]  ;;  %v720_v53 = vpack.c.bf16 %v325_v51, %v324_v50  ;;  %v357_v54 = vld [vmem:[#allocation7 + $0x168] sm:$0xff]  ;;  %v374_v58 = vld [vmem:[#allocation7 + $0x1f0] sm:$0xff]  ;;  %v722_v59 = vpack.c.bf16 %v343_v57, %v342_v56 }
  0x61   :  { %701 = vmatpush3.bf16.msra.mxu0 %v700_v62  ;;  %v752_v55 = vpack.c.bf16 %v357_v54, %v356_v52  ;;  %v375_v60 = vld [vmem:[#allocation7 + $0x1f8] sm:$0xff]  ;;  %v326_v61 = vld [vmem:[#allocation7 + $0x70] sm:$0xff] }
  0x62   :  { %733 = vmatpush3.bf16.msra.mxu1 %v732_v63  ;;  %703 = vmatprep.subr.bf16.mxu0 %v702_v1  ;;  %v327_v62 = vld [vmem:[#allocation7 + $0x78] sm:$0xff]  ;;  %v754_v63 = vpack.c.bf16 %v375_v60, %v374_v58  ;;  %v358_v2 = vld [vmem:[#allocation7 + $0x170] sm:$0xff] }
  0x63   :  { %735 = vmatprep.subr.bf16.mxu1 %v734_v5  ;;  %v724_v1 = vpack.c.bf16 %v327_v62, %v326_v61  ;;  %v359_v3 = vld [vmem:[#allocation7 + $0x178] sm:$0xff]  ;;  %v130_v5 = vlaneseq  ;;  %v128_v8 = vld [vmem:[%s969_s2] sm:$0xf] }
  0x64   :  { %v756_v4 = vpack.c.bf16 %v359_v3, %v358_v2  ;;  %v553_v41 = vld [vmem:[%s971_s4] ss:$0 sm:$0xff]  ;;  %s833_s4 = scalar_lea.vmem %s541_s9, 256 }
  0x65   :  { %705 = vmatpush3.bf16.msra.mxu0 %v704_v0  ;;  %v131_v6 = vshrl.u32 %v130_v5, 7  ;;  %p834_p10 = scmp.ne.s32.totalorder %s541_s9, %s833_s4  ;;  %p839_p12 = scmp.lt.s32.totalorder %s833_s4, %s833_s4 }
  0x66   :  { %737 = vmatpush3.bf16.msra.mxu1 %v736_v11  ;;  %707 = vmatprep.subr.bf16.mxu0 %v706_v12 }
  0x67   :  { %739 = vmatprep.subr.bf16.mxu1 %v738_v16  ;;  %v132_v7 = vsub.s32 0, %v131_v6  ;;  %v140_v9 = vsub.s32 2, %v131_v6  ;;  %v136_v10 = vsub.s32 1, %v131_v6  ;;  %v144_v0 = vsub.s32 3, %v131_v6  ;;  %p840_p13 = por %p839_p12, %p838_p11 }
  0x69   :  { %709 = vmatpush3.bf16.msra.mxu0 %v708_v22  ;;  %v133_v11 = vrot.slane %v128_v8, %v132_v7  ;;  %v141_v12 = vrot.slane %v128_v8, %v140_v9  ;;  %v137_v13 = vrot.slane %v128_v8, %v136_v10  ;;  %v145_v14 = vrot.slane %v128_v8, %v144_v0  ;;  %p841_p0 = pnand %p840_p13, %p834_p10 }
  0x6a   :  { %741 = vmatpush3.bf16.msra.mxu1 %v740_v23  ;;  %711 = vmatprep.subr.bf16.mxu0 %v710_v24 }
  0x6b   :  { %743 = vmatprep.subr.bf16.mxu1 %v742_v28 }
  0x6d   :  { %713 = vmatpush3.bf16.msra.mxu0 %v712_v34 }
  0x6e   :  { %745 = vmatpush3.bf16.msra.mxu1 %v744_v35  ;;  %715 = vmatprep.subr.bf16.mxu0 %v714_v36 }
  0x6f   :  { %747 = vmatprep.subr.bf16.mxu1 %v746_v40 }
  0x71   :  { %717 = vmatpush3.bf16.msra.mxu0 %v716_v46 }
  0x72   :  { %749 = vmatpush3.bf16.msra.mxu1 %v748_v47  ;;  %719 = vmatprep.subr.bf16.mxu0 %v718_v48 }
  0x73   :  { %751 = vmatprep.subr.bf16.mxu1 %v750_v49 }
  0x75   :  { %721 = vmatpush3.bf16.msra.mxu0 %v720_v53 }
  0x76   :  { %753 = vmatpush3.bf16.msra.mxu1 %v752_v55  ;;  %723 = vmatprep.subr.bf16.mxu0 %v722_v59 }
  0x77   :  { %755 = vmatprep.subr.bf16.mxu1 %v754_v63 }
  0x79   :  { %725 = vmatpush3.bf16.msra.mxu0 %v724_v1 }
  0x7a   :  { %757 = vmatpush3.bf16.msra.mxu1 %v756_v4 }
 0x12e   :  { %v216_v15 = vpop.f32.mrb[0].mxu0 }
 0x12f   :  { %v217_v16 = vadd.f32 %v216_v15, %v133_v11  ;;  %v293_v17 = vpop.f32.mrb[0].mxu1  ;;  %v218_v18 = vpop.f32.mrb[1].mxu0 }
 0x130   :  { %v294_v19 = vadd.f32 %v293_v17, %v141_v12  ;;  %v219_v20 = vadd.f32 %v218_v18, %v137_v13  ;;  %v295_v21 = vpop.f32.mrb[1].mxu1 }
 0x131   :  { %v296_v22 = vadd.f32 %v295_v21, %v145_v14  ;;  %v304_v26 = vmax.f32 %v217_v16, 0.0 }
 0x132   :  { %v306_v23 = vmax.f32 %v294_v19, 0.0  ;;  %v305_v24 = vmax.f32 %v219_v20, 0.0  ;;  %v222_v25 = vpop.f32.mrb[2].mxu0 }
 0x133   :  { %v307_v27 = vmax.f32 %v296_v22, 0.0  ;;  %v223_v28 = vadd.f32 %v222_v25, %v133_v11  ;;  %v299_v29 = vpop.f32.mrb[2].mxu1  ;;  %v224_v30 = vpop.f32.mrb[3].mxu0 }
 0x134   :  { %v300_v31 = vadd.f32 %v299_v29, %v141_v12  ;;  %v225_v32 = vadd.f32 %v224_v30, %v137_v13  ;;  %v301_v33 = vpop.f32.mrb[3].mxu1  ;;  %447 = vmatprep.mubr.f32.mxu0 %v305_v24 }
 0x135   :  { %v302_v34 = vadd.f32 %v301_v33, %v145_v14  ;;  %522 = vmatprep.mubr.f32.mxu1 %v307_v27  ;;  %448 = vmatmul.mubr.f32.vlgmr.msra.gmra.mrb[4].mxu0 %v304_v26  ;;  %v308_v37 = vmax.f32 %v223_v28, 0.0 }
 0x136   :  { %v310_v35 = vmax.f32 %v300_v31, 0.0  ;;  %v309_v36 = vmax.f32 %v225_v32, 0.0  ;;  %523 = vmatmul.mubr.f32.vlgmr.msra.gmra.mrb[4].mxu1 %v306_v23 }
 0x137   :  { %v311_v38 = vmax.f32 %v302_v34, 0.0 }
 0x138   :  { %452 = vmatprep.mubr.f32.mxu0 %v309_v36 }
 0x139   :  { %527 = vmatprep.mubr.f32.mxu1 %v311_v38  ;;  %453 = vmatmul.mubr.f32.gmra.mrb[6].mxu0 %v308_v37 }
 0x13a   :  { %528 = vmatmul.mubr.f32.gmra.mrb[6].mxu1 %v310_v35 }
 0x208   :  { %v586_v39 = vpop.f32.mrb[4].mxu0 }
 0x209   :  { %v624_v40 = vpop.f32.mrb[4].mxu1  ;;  %v587_v42 = vpop.f32.mrb[5].mxu0 }
 0x20a   :  { %v588_v43 = vadd.f32 %v587_v42, %v586_v39  ;;  %v625_v44 = vpop.f32.mrb[5].mxu1 }
 0x20b   :  { %v626_v45 = vadd.f32 %v625_v44, %v624_v40 }
 0x20c   :  { %v450_v46 = vadd.f32 %v588_v43, %v553_v41  ;;  %v589_v47 = vpop.f32.mrb[6].mxu0 }
 0x20d   :  { %v627_v48 = vpop.f32.mrb[6].mxu1  ;;  %v590_v49 = vpop.f32.mrb[7].mxu0 }
 0x20e   :  { %v525_v50 = vadd.f32 %v626_v45, %v450_v46  ;;  %v591_v51 = vadd.f32 %v590_v49, %v589_v47  ;;  %v628_v52 = vpop.f32.mrb[7].mxu1 }
 0x20f   :  { %v629_v53 = vadd.f32 %v628_v52, %v627_v48 }
 0x210   :  { %533 = vst [vmem:[#allocation8] sm:$0xff] %v525_v50  ;;  %v455_v54 = vadd.f32 %v591_v51, %v553_v41 }
 0x212   :  { %v530_v55 = vadd.f32 %v629_v53, %v455_v54 }
 0x214   :  { %534 = vst [vmem:[#allocation8 + $0x8] sm:$0xff] %v530_v55 }
 0x215   :  { %844 = shalt.err (!%p841_p0)
}
 0x216   :  { %s845_s12 = scalar_lea.hbm %s972_s5, 256 }
 0x217   :  { %p846_p1 = scmp.ne.s32.totalorder %s972_s5, %s845_s12  ;;  %p849_p2 = scmp.lt.u32.totalorder %s845_s12, %s972_s5 }
 0x219   :  { %p851_p3 = pnand %p849_p2, %p846_p1 }
 0x21b   :  { %854 = shalt.err (!%p851_p3)
}
 0x21c   :  { %546 = dma.vmem_to_hbm [thread:$0]  %s541_s9, 256, %s972_s5, [#allocation4], %s865_s1, %s865_s1, %s866_s17  }
 0x21d   :  { %859 = dma.done.wait [#allocation4], 256  }
 0x21e   :  { %860 = vsyncadd [#allocation4], 4294967040 }
 0x21f   :  { %550 = vsyncpa [#allocation3], 1 }
 0x220   :  { %551 = vsyncpa [#allocation6], 1 }
 0x221   :  { %552 = vsyncpa [#allocation4], 1 }

</bundles_post_ra>
